<compile_context>
chip_gen: v7x
topology: tpu7x:2x2x1
jax: 0.10.0
libtpu: 0.0.40
codegen_flags: <defaults>
</compile_context>

<pallas_src>
import jax
import jax.numpy as jnp
from jax.experimental import pallas as pl
from jax.experimental.pallas import tpu as pltpu

HI = jax.lax.Precision.HIGHEST


def fusion_kernel(v_ref, w_ref, b2_ref, b3_ref, m_ref, s2_ref, s3_ref):
    v = v_ref[...]                                  # [B, T, D] f32
    w13 = w_ref[0, :].reshape(1, 1, -1)             # [1, 1, D] folded fc1->fc3 (video part)
    w24 = w_ref[1, :].reshape(1, 1, -1)             # [1, 1, D] folded fc2->fc4 (video part)
    mask = m_ref[...]                               # [B, T]
    neg = (1.0 - mask) * (-1e30)

    # ---- branch 1: folded fc1->fc3, mask, sigmoid (VPU mul + lane reduce) ----
    l2 = jnp.sum(v * w13, axis=-1) + b2_ref[...] + neg          # [B, T]
    z2 = jnp.exp(-jnp.abs(l2))                                   # stable sigmoid
    inv2 = 1.0 / (1.0 + z2)
    s2_ref[...] = jnp.where(l2 >= 0.0, inv2, z2 * inv2)          # lane-dense store

    # ---- branch 2: folded fc2->fc4, mask, softmax over T (lane axis) ---------
    l3 = jnp.sum(v * w24, axis=-1) + b3_ref[...] + neg           # [B, T]
    mx = jnp.max(l3, axis=-1, keepdims=True)
    e = jnp.exp(l3 - mx)
    denom = jnp.sum(e, axis=-1, keepdims=True)
    # exact reciprocal kept to preserve f32 fidelity vs. the reference softmax
    s3_ref[...] = e * pl.reciprocal(denom, approx=False)


def fold_params(raw):
    """Pre-compose fc1->fc3 and fc2->fc4 (no activation in between)."""
    W1, b1, W2, b2, W3, b3, W4, b4 = raw
    D = W1.shape[0]
    w13 = jnp.dot(W3, W1, precision=HI)[0]                       # [2D]
    w24 = jnp.dot(W4, W2, precision=HI)[0]                       # [2D]
    c3 = jnp.dot(W3[0], b1, precision=HI) + b3[0]                # scalar
    c4 = jnp.dot(W4[0], b2, precision=HI) + b4[0]                # scalar
    wv = jnp.stack([w13[:D], w24[:D]], axis=0)                   # [2, D] video part
    ws = jnp.stack([w13[D:], w24[D:]], axis=0)                   # [2, D] sentence part
    c = jnp.stack([c3, c4])                                      # [2]
    return wv, ws, c


def fusion_forward(video, sentence, v_mask, folded):
    """video: [B,T,D], sentence: [B,D], v_mask: [B,T] -> (scores2, scores3) each [B,T]."""
    wv, ws, c = folded
    B, T, D = video.shape

    video = video.astype(jnp.float32)
    mask = v_mask.astype(jnp.float32)
    # Sentence projections hoisted to XLA: per-batch scalar biases for each branch.
    sbias = jnp.dot(sentence.astype(jnp.float32), ws.T, precision=HI) + c   # [B, 2]
    bias2 = sbias[:, 0:1]                                                   # [B, 1]
    bias3 = sbias[:, 1:2]                                                   # [B, 1]

    grid_spec = pltpu.PrefetchScalarGridSpec(
        num_scalar_prefetch=0,
        grid=(1,),  # whole (small) batch in one step: avoids per-step overhead
        in_specs=[
            pl.BlockSpec((B, T, D), lambda i: (0, 0, 0)),   # video
            pl.BlockSpec((2, D), lambda i: (0, 0)),         # folded video weights
            pl.BlockSpec((B, 1), lambda i: (0, 0)),         # per-batch bias (branch 1)
            pl.BlockSpec((B, 1), lambda i: (0, 0)),         # per-batch bias (branch 2)
            pl.BlockSpec((B, T), lambda i: (0, 0)),         # mask
        ],
        out_specs=[
            pl.BlockSpec((B, T), lambda i: (0, 0)),         # scores2, lane-dense
            pl.BlockSpec((B, T), lambda i: (0, 0)),         # scores3, lane-dense
        ],
    )

    s2, s3 = pl.pallas_call(
        fusion_kernel,
        out_shape=(jax.ShapeDtypeStruct((B, T), jnp.float32),
                   jax.ShapeDtypeStruct((B, T), jnp.float32)),
        grid_spec=grid_spec,
        compiler_params=pltpu.CompilerParams(dimension_semantics=("arbitrary",)),
    )(video, wv, bias2, bias3, mask)
    return s2, s3


def init_params(key, dim):
    """Raw params mirroring nn.Linear shapes (fc1/fc2: 2*dim->dim, fc3/fc4: dim->1)."""
    ks = jax.random.split(key, 8)
    u = lambda k, shape, fan_in: jax.random.uniform(
        k, shape, jnp.float32, -1.0 / (fan_in ** 0.5), 1.0 / (fan_in ** 0.5))
    W1 = u(ks[0], (dim, 2 * dim), 2 * dim); b1 = u(ks[1], (dim,), 2 * dim)
    W2 = u(ks[2], (dim, 2 * dim), 2 * dim); b2 = u(ks[3], (dim,), 2 * dim)
    W3 = u(ks[4], (1, dim), dim);           b3 = u(ks[5], (1,), dim)
    W4 = u(ks[6], (1, dim), dim);           b4 = u(ks[7], (1,), dim)
    return (W1, b1, W2, b2, W3, b3, W4, b4)


def reference_forward(video, sentence, v_mask, raw):
    """Pure-JAX reference replicating the PyTorch forward exactly (f32, HIGHEST)."""
    W1, b1, W2, b2, W3, b3, W4, b4 = raw
    B, T, D = video.shape
    m = v_mask.astype(jnp.float32)
    sent = jnp.broadcast_to(sentence[:, None, :], (B, T, D))
    fusion = jnp.concatenate([video, sent], axis=-1)                  # [B, T, 2D]
    h1 = jnp.einsum("btk,dk->btd", fusion, W1, precision=HI) + b1
    l2 = jnp.einsum("btd,od->bto", h1, W3, precision=HI)[..., 0] + b3[0]
    scores2 = jax.nn.sigmoid(l2 + (1.0 - m) * (-1e30))
    h2 = jnp.einsum("btk,dk->btd", fusion, W2, precision=HI) + b2
    l3 = jnp.einsum("btd,od->bto", h2, W4, precision=HI)[..., 0] + b4[0]
    scores3 = jax.nn.softmax(l3 + (1.0 - m) * (-1e30), axis=-1)
    return scores2, scores3


if __name__ == "__main__":
    B, T, D = 2, 16, 32
    key = jax.random.PRNGKey(0)
    k_v, k_s, k_p = jax.random.split(key, 3)

    video = jax.random.normal(k_v, (B, T, D), jnp.float32)
    sentence = jax.random.normal(k_s, (B, D), jnp.float32)
    # mask: first batch fully valid, second batch has trailing padding
    v_mask = jnp.concatenate(
        [jnp.ones((1, T), jnp.float32),
         jnp.concatenate([jnp.ones((1, T - 4), jnp.float32),
                          jnp.zeros((1, 4), jnp.float32)], axis=1)], axis=0)

    raw = init_params(k_p, D)
    folded = fold_params(raw)

    s2, s3 = fusion_forward(video, sentence, v_mask, folded)
    jax.block_until_ready((s2, s3))

    r2, r3 = reference_forward(video, sentence, v_mask, raw)
    assert jnp.allclose(s2, r2, atol=2e-5, rtol=2e-5), "scores2 mismatch"
    assert jnp.allclose(s3, r3, atol=2e-5, rtol=2e-5), "scores3 mismatch"

    print("KERNEL_OK")
</pallas_src>

<mosaic_0001>
module attributes {stable_mosaic.version = 11 : i64} {
  func.func @fusion_kernel(%arg0: i32, %arg1: memref<2x16x32xf32, #tpu.memory_space<vmem>>, %arg2: memref<2x32xf32, #tpu.memory_space<vmem>>, %arg3: memref<2x1xf32, #tpu.memory_space<vmem>>, %arg4: memref<2x1xf32, #tpu.memory_space<vmem>>, %arg5: memref<2x16xf32, #tpu.memory_space<vmem>>, %arg6: memref<2x16xf32, #tpu.memory_space<vmem>>, %arg7: memref<2x16xf32, #tpu.memory_space<vmem>>) attributes {dimension_semantics = [#tpu.dimension_semantics<arbitrary>], iteration_bounds = array<i64: 1>, scalar_prefetch = 0 : i64, scratch_operands = 0 : i64, tpu.core_type = #tpu.core_type<tc>, window_params = [{pipeline_mode = #tpu.pipeline_mode<synchronous>, transform_indices = @transform_0, window_bounds = array<i64: 2, 16, 32>}, {pipeline_mode = #tpu.pipeline_mode<synchronous>, transform_indices = @transform_1, window_bounds = array<i64: 2, 32>}, {pipeline_mode = #tpu.pipeline_mode<synchronous>, transform_indices = @transform_2, window_bounds = array<i64: 2, 1>}, {pipeline_mode = #tpu.pipeline_mode<synchronous>, transform_indices = @transform_3, window_bounds = array<i64: 2, 1>}, {pipeline_mode = #tpu.pipeline_mode<synchronous>, transform_indices = @transform_4, window_bounds = array<i64: 2, 16>}, {pipeline_mode = #tpu.pipeline_mode<synchronous>, transform_indices = @transform_5, window_bounds = array<i64: 2, 16>}, {pipeline_mode = #tpu.pipeline_mode<synchronous>, transform_indices = @transform_6, window_bounds = array<i64: 2, 16>}]} {
    %c0 = arith.constant 0 : index
    %c0_0 = arith.constant 0 : index
    %c0_1 = arith.constant 0 : index
    %0 = vector.load %arg1[%c0, %c0_0, %c0_1] : memref<2x16x32xf32, #tpu.memory_space<vmem>>, vector<2x16x32xf32>
    %c0_2 = arith.constant 0 : index
    %c0_3 = arith.constant 0 : index
    %1 = vector.load %arg2[%c0_2, %c0_3] : memref<2x32xf32, #tpu.memory_space<vmem>>, vector<1x32xf32>
    %2 = vector.shape_cast %1 : vector<1x32xf32> to vector<32xf32>
    %3 = vector.shape_cast %2 : vector<32xf32> to vector<1x1x32xf32>
    %c1 = arith.constant 1 : index
    %c0_4 = arith.constant 0 : index
    %4 = vector.load %arg2[%c1, %c0_4] : memref<2x32xf32, #tpu.memory_space<vmem>>, vector<1x32xf32>
    %5 = vector.shape_cast %4 : vector<1x32xf32> to vector<32xf32>
    %6 = vector.shape_cast %5 : vector<32xf32> to vector<1x1x32xf32>
    %c0_5 = arith.constant 0 : index
    %c0_6 = arith.constant 0 : index
    %7 = vector.load %arg5[%c0_5, %c0_6] : memref<2x16xf32, #tpu.memory_space<vmem>>, vector<2x16xf32>
    %cst = arith.constant 1.000000e+00 : f32
    %8 = vector.broadcast %cst : f32 to vector<2x16xf32>
    %9 = arith.subf %8, %7 : vector<2x16xf32>
    %cst_7 = arith.constant -1.000000e+30 : f32
    %10 = vector.broadcast %cst_7 : f32 to vector<2x16xf32>
    %11 = arith.mulf %9, %10 : vector<2x16xf32>
    %12 = vector.broadcast %3 : vector<1x1x32xf32> to vector<2x16x32xf32>
    %13 = arith.mulf %0, %12 : vector<2x16x32xf32>
    %cst_8 = arith.constant dense<0.000000e+00> : vector<2x16xf32>
    %14 = vector.multi_reduction <add>, %13, %cst_8 [2] : vector<2x16x32xf32> to vector<2x16xf32>
    %c0_9 = arith.constant 0 : index
    %c0_10 = arith.constant 0 : index
    %15 = vector.load %arg3[%c0_9, %c0_10] : memref<2x1xf32, #tpu.memory_space<vmem>>, vector<2x1xf32>
    %16 = vector.broadcast %15 : vector<2x1xf32> to vector<2x16xf32>
    %17 = arith.addf %14, %16 : vector<2x16xf32>
    %18 = arith.addf %17, %11 : vector<2x16xf32>
    %19 = math.absf %18 : vector<2x16xf32>
    %cst_11 = arith.constant 0.000000e+00 : f32
    %20 = vector.broadcast %cst_11 : f32 to vector<2x16xf32>
    %21 = arith.subf %20, %19 : vector<2x16xf32>
    %22 = math.exp %21 : vector<2x16xf32>
    %cst_12 = arith.constant 1.000000e+00 : f32
    %23 = vector.broadcast %cst_12 : f32 to vector<2x16xf32>
    %24 = arith.addf %23, %22 : vector<2x16xf32>
    %cst_13 = arith.constant 1.000000e+00 : f32
    %25 = vector.broadcast %cst_13 : f32 to vector<2x16xf32>
    %26 = arith.divf %25, %24 : vector<2x16xf32>
    %cst_14 = arith.constant 0.000000e+00 : f32
    %27 = vector.broadcast %cst_14 : f32 to vector<2x16xf32>
    %28 = arith.cmpf oge, %18, %27 : vector<2x16xf32>
    %29 = arith.mulf %22, %26 : vector<2x16xf32>
    %30 = arith.select %28, %26, %29 : vector<2x16xi1>, vector<2x16xf32>
    %c0_15 = arith.constant 0 : index
    %c0_16 = arith.constant 0 : index
    %31 = vector.load %arg6[%c0_15, %c0_16] : memref<2x16xf32, #tpu.memory_space<vmem>>, vector<2x16xf32>
    tpu.vector_store %arg6[%c0_15, %c0_16], %30 {strides = array<i32>} : memref<2x16xf32, #tpu.memory_space<vmem>>, vector<2x16xf32>,
    %32 = vector.broadcast %6 : vector<1x1x32xf32> to vector<2x16x32xf32>
    %33 = arith.mulf %0, %32 : vector<2x16x32xf32>
    %cst_17 = arith.constant dense<0.000000e+00> : vector<2x16xf32>
    %34 = vector.multi_reduction <add>, %33, %cst_17 [2] : vector<2x16x32xf32> to vector<2x16xf32>
    %c0_18 = arith.constant 0 : index
    %c0_19 = arith.constant 0 : index
    %35 = vector.load %arg4[%c0_18, %c0_19] : memref<2x1xf32, #tpu.memory_space<vmem>>, vector<2x1xf32>
    %36 = vector.broadcast %35 : vector<2x1xf32> to vector<2x16xf32>
    %37 = arith.addf %34, %36 : vector<2x16xf32>
    %38 = arith.addf %37, %11 : vector<2x16xf32>
    %cst_20 = arith.constant dense<0xFF800000> : vector<2xf32>
    %39 = vector.multi_reduction <maximumf>, %38, %cst_20 [1] : vector<2x16xf32> to vector<2xf32>
    %40 = vector.shape_cast %39 : vector<2xf32> to vector<2x1xf32>
    %41 = vector.broadcast %40 : vector<2x1xf32> to vector<2x16xf32>
    %42 = arith.subf %38, %41 : vector<2x16xf32>
    %43 = math.exp %42 : vector<2x16xf32>
    %cst_21 = arith.constant dense<0.000000e+00> : vector<2xf32>
    %44 = vector.multi_reduction <add>, %43, %cst_21 [1] : vector<2x16xf32> to vector<2xf32>
    %45 = vector.shape_cast %44 : vector<2xf32> to vector<2x1xf32>
    %46 = tpu.reciprocal %45 : vector<2x1xf32> -> vector<2x1xf32>
    %47 = vector.broadcast %46 : vector<2x1xf32> to vector<2x16xf32>
    %48 = arith.mulf %43, %47 : vector<2x16xf32>
    %c0_22 = arith.constant 0 : index
    %c0_23 = arith.constant 0 : index
    %49 = vector.load %arg7[%c0_22, %c0_23] : memref<2x16xf32, #tpu.memory_space<vmem>>, vector<2x16xf32>
    tpu.vector_store %arg7[%c0_22, %c0_23], %48 {strides = array<i32>} : memref<2x16xf32, #tpu.memory_space<vmem>>, vector<2x16xf32>,
    return
  }
  func.func @transform_0(%arg0: i32) -> (i32, i32, i32) {
    %c0_i32 = arith.constant 0 : i32
    %c0_i32_0 = arith.constant 0 : i32
    %c0_i32_1 = arith.constant 0 : i32
    %c0_i32_2 = arith.constant 0 : i32
    return %c0_i32, %c0_i32_0, %c0_i32_1 : i32, i32, i32
  }
  func.func @transform_1(%arg0: i32) -> (i32, i32) {
    %c0_i32 = arith.constant 0 : i32
    %c0_i32_0 = arith.constant 0 : i32
    %c0_i32_1 = arith.constant 0 : i32
    return %c0_i32, %c0_i32_0 : i32, i32
  }
  func.func @transform_2(%arg0: i32) -> (i32, i32) {
    %c0_i32 = arith.constant 0 : i32
    %c0_i32_0 = arith.constant 0 : i32
    %c0_i32_1 = arith.constant 0 : i32
    return %c0_i32, %c0_i32_0 : i32, i32
  }
  func.func @transform_3(%arg0: i32) -> (i32, i32) {
    %c0_i32 = arith.constant 0 : i32
    %c0_i32_0 = arith.constant 0 : i32
    %c0_i32_1 = arith.constant 0 : i32
    return %c0_i32, %c0_i32_0 : i32, i32
  }
  func.func @transform_4(%arg0: i32) -> (i32, i32) {
    %c0_i32 = arith.constant 0 : i32
    %c0_i32_0 = arith.constant 0 : i32
    %c0_i32_1 = arith.constant 0 : i32
    return %c0_i32, %c0_i32_0 : i32, i32
  }
  func.func @transform_5(%arg0: i32) -> (i32, i32) {
    %c0_i32 = arith.constant 0 : i32
    %c0_i32_0 = arith.constant 0 : i32
    %c0_i32_1 = arith.constant 0 : i32
    return %c0_i32, %c0_i32_0 : i32, i32
  }
  func.func @transform_6(%arg0: i32) -> (i32, i32) {
    %c0_i32 = arith.constant 0 : i32
    %c0_i32_0 = arith.constant 0 : i32
    %c0_i32_1 = arith.constant 0 : i32
    return %c0_i32, %c0_i32_0 : i32, i32
  }
}

</mosaic_0001>

<bundles_post_ra>
// kernel: tpu_custom_call.1
= control target key start
LH: loop header
LB: loop body
LE: loop exit
PB: predicated region body
PF: predicated region fallthrough
CT: control target
= control target key end

     0   :  { %12 = vsyncpa [#allocation3], 0  ;;  %s739_s0 = inlined_call_operand.hbm [shape: f32[2,16,32], index: 0, kind: input, shape index: {}]   ;;  %s740_s1 = inlined_call_operand.vmem [shape: f32[2,32], index: 1, kind: input, shape index: {}]   ;;  %s741_s2 = inlined_call_operand.vmem [shape: f32[2,1], index: 2, kind: input, shape index: {}]   ;;  %s742_s3 = inlined_call_operand.vmem [shape: f32[2,1], index: 3, kind: input, shape index: {}]   ;;  %s743_s4 = inlined_call_operand.vmem [shape: f32[2,16], index: 4, kind: input, shape index: {}]   ;;  %s744_s5 = inlined_call_operand.hbm [shape: f32[2,16], index: 5, kind: output, shape index: {0}]   ;;  %s745_s6 = inlined_call_operand.hbm [shape: f32[2,16], index: 6, kind: output, shape index: {1}]  }
   0x1   :  { %13 = vsyncpa [#allocation4], 0 }
   0x2   :  { %14 = vsyncpa [#allocation7], 0  ;;  %s535_s21 = smov [#allocation2]   ;;  %s463_s25 = scalar_lea.hbm %s739_s0, 512 }
   0x3   :  { %s20_s22 = sshll.u32 %s535_s21, 4  ;;  %p464_p0 = scmp.ne.s32.totalorder %s739_s0, %s463_s25  ;;  %s21_s22 = int_to_ptr.vmem [resolvable:$true] %s20_s22 }
   0x4   :  { %p467_p1 = scmp.lt.u32.totalorder %s463_s25, %s739_s0 }
   0x6   :  { %p469_p2 = pnand %p467_p1, %p464_p0 }
   0x8   :  { %472 = shalt.err (!%p469_p2)
}
   0x9   :  { %s473_s30 = scalar_lea.vmem %s21_s22, 512  ;;  %p478_p4 = scmp.lt.s32.totalorder %s21_s22, %s21_s22 }
   0xa   :  { %p474_p3 = scmp.ne.s32.totalorder %s21_s22, %s473_s30  ;;  %p479_p5 = scmp.lt.s32.totalorder %s473_s30, %s473_s30 }
   0xc   :  { %p480_p6 = por %p479_p5, %p478_p4 }
   0xe   :  { %p481_p7 = pnand %p480_p6, %p474_p3 }
  0x10   :  { %484 = shalt.err (!%p481_p7)
}
  0x11   :  { %s536_s7 = smov 128   ;;  %s537_s8 = smov 8  }
  0x12   :  { %26 = dma.hbm_to_vmem [thread:$0]  %s739_s0, 512, %s21_s22, [#allocation3], %s536_s7, %s536_s7, %s537_s8  }
  0x13   :  { %529 = dma.done.wait [#allocation3], 512  }
  0x14   :  { %530 = vsyncadd [#allocation3], 4294966784  ;;  %v73_v0 = vlaneseq  ;;  %v538_v1 = vmov 0   ;;  %v592_v7 = vld [vmem:[#allocation2 + $0x10] sm:$0xff]  ;;  %v428_v8 = vld [vmem:[%s740_s1 + $0x1] ss:$0 sm:$0xff] }
  0x15   :  { %435 = vset.pattern.permute.xlu0 %v538_v1  ;;  %436 = vset.pattern.permute.xlu1 %v538_v1  ;;  %vm55_vm0 = vcmask 261120   ;;  %v597_v9 = vld [vmem:[#allocation2] sm:$0xff]  ;;  %v207_v10 = vmul.f32 %v428_v8, %v592_v7  ;;  %v601_v12 = vld [vmem:[#allocation2 + $0x18] sm:$0xff]  ;;  %v39_v13 = vld [vmem:[#allocation2 + $0x8] sm:$0xff]  ;;  %vm185_vm1 = vcmask 130112   ;;  %vm196_vm2 = vcmask 1041409  }
  0x16   :  { %v74_v2 = vshrl.u32 %v73_v0, 7  ;;  %v175_v3 = vand.u32 127, %v73_v0  ;;  %v205_v11 = vmul.f32 %v428_v8, %v597_v9  ;;  %v208_v14 = vmul.f32 %v428_v8, %v601_v12  ;;  %v44_v20 = vld [vmem:[%s743_s4] sm:$0x3] }
  0x17   :  { %v206_v15 = vmul.f32 %v428_v8, %v39_v13  ;;  %v215_v16 = vsel %vm55_vm0, %v207_v10, 0.0  ;;  %v45_v21 = vsub.f32 1.0, %v44_v20  ;;  %v221_v26 = vld [vmem:[%s742_s3] sm:$0x3]  ;;  %vm199_vm3 = vcmask 123904  }
  0x18   :  { %v588_v4 = vsub.s32 %v175_v3, %v74_v2  ;;  %v180_v5 = vadd.s32 4294967288, %v175_v3  ;;  %v209_v17 = vsel %vm55_vm0, %v205_v11, 0.0  ;;  %216 = vadd.xlane.f32.xlu1 %v215_v16  ;;  %v218_v18 = vsel %vm55_vm0, %v208_v14, 0.0  ;;  %v638_v52 = vld [vmem:[%s740_s1] ss:$0 sm:$0xff] }
  0x19   :  { %210 = vadd.xlane.f32.xlu0 %v209_v17  ;;  %v212_v19 = vsel %vm55_vm0, %v206_v15, 0.0  ;;  %v46_v22 = vmul.f32 -1e+30, %v45_v21  ;;  %v611_v23 = vsub.s32 0, %v74_v2  ;;  %v614_v25 = vsub.s32 1, %v74_v2 }
  0x1a   :  { %v590_v6 = vsub.s32 %v180_v5, %v74_v2  ;;  %v52_v58 = vmul.f32 %v638_v52, %v39_v13  ;;  %v53_v62 = vmul.f32 %v638_v52, %v592_v7  ;;  %v54_v0 = vmul.f32 %v638_v52, %v601_v12  ;;  %v68_v2 = vld [vmem:[%s741_s2] sm:$0x3]  ;;  %s539_s2 = smov [#allocation5]  }
  0x1b   :  { %v91_v24 = vrot.slane %v46_v22, %v611_v23  ;;  %v102_v27 = vrot.slane %v46_v22, %v614_v25  ;;  %s404_s17 = sshll.u32 %s539_s2, 4  ;;  %s405_s17 = int_to_ptr.vmem [resolvable:$true] %s404_s17 }
  0x1c   :  { %219 = vadd.xlane.f32.xlu1 %v218_v18  ;;  %v59_v61 = vsel %vm55_vm0, %v52_v58, 0.0  ;;  %v62_v63 = vsel %vm55_vm0, %v53_v62, 0.0  ;;  %v65_v1 = vsel %vm55_vm0, %v54_v0, 0.0  ;;  %s485_s18 = scalar_lea.vmem %s405_s17, 32  ;;  %p490_p9 = scmp.lt.s32.totalorder %s405_s17, %s405_s17 }
  0x1d   :  { %213 = vadd.xlane.f32.xlu0 %v212_v19  ;;  %p486_p8 = scmp.ne.s32.totalorder %s405_s17, %s485_s18  ;;  %p491_p10 = scmp.lt.s32.totalorder %s485_s18, %s485_s18 }
  0x1f   :  { %p492_p11 = por %p491_p10, %p490_p9 }
  0x21   :  { %p493_p12 = pnand %p492_p11, %p486_p8 }
  0x2d   :  { %93 = vbcast.lane.b32.xlu1 %v91_v24, 256 }
  0x31   :  { %97 = vbcast.lane.b32.xlu1 %v91_v24, 264 }
  0x33   :  { %224 = vperm.xlu0 %435, %v221_v26  }
  0x35   :  { %104 = vbcast.lane.b32.xlu1 %v102_v27, 256 }
  0x39   :  { %108 = vbcast.lane.b32.xlu1 %v102_v27, 264 }
  0xa5   :  { %v217_v28 = vpop.xlane.xlu1 %216 }
  0xa6   :  { %v211_v29 = vpop.xlane.xlu0 %210 }
  0xa9   :  { %v220_v30 = vpop.xlane.xlu1 %219 }
  0xaa   :  { %v214_v31 = vpop.xlane.xlu0 %213 }
  0xad   :  { %v620_v32 = vpop.permute.xlu1 %93 }
  0xb1   :  { %v623_v35 = vpop.permute.xlu1 %97 }
  0xb2   :  { %v225_v33 = vpop.permute.xlu0 %224 }
  0xb3   :  { %v229_v34 = vrot.slane %v225_v33, %v611_v23  ;;  %v233_v37 = vrot.slane %v225_v33, %v614_v25 }
  0xb5   :  { %v236_v36 = vadd.f32 %v229_v34, %v211_v29  ;;  %v237_v38 = vadd.f32 %v229_v34, %v214_v31  ;;  %v627_v40 = vpop.permute.xlu1 %104  ;;  %v238_v41 = vadd.f32 %v233_v37, %v217_v28  ;;  %v239_v45 = vadd.f32 %v233_v37, %v220_v30 }
  0xb7   :  { %v240_v39 = vadd.f32 %v236_v36, %v620_v32  ;;  %v241_v42 = vadd.f32 %v237_v38, %v623_v35  ;;  %v242_v43 = vadd.f32 %v238_v41, %v627_v40 }
  0xb9   :  { %249 = vperm.xlu1 %436, %v240_v39   ;;  %v631_v44 = vpop.permute.xlu1 %108 }
  0xba   :  { %v243_v46 = vadd.f32 %v239_v45, %v631_v44 }
  0xbd   :  { %252 = vperm.xlu1 %436, %v241_v42  }
  0xc1   :  { %255 = vperm.xlu1 %436, %v242_v43  }
  0xc5   :  { %258 = vperm.xlu1 %436, %v243_v46  }
 0x138   :  { %v250_v47 = vpop.permute.xlu1 %249 }
 0x139   :  { %v263_v53 = vrot.slane %v250_v47, %v588_v4 }
 0x13c   :  { %v253_v48 = vpop.permute.xlu1 %252 }
 0x13d   :  { %v267_v50 = vrot.slane %v253_v48, %v590_v6 }
 0x13f   :  { %v268_v56 = vsel %vm185_vm1, %v267_v50, %v263_v53 }
 0x140   :  { %v256_v49 = vpop.permute.xlu1 %255 }
 0x141   :  { %v272_v54 = vrot.slane %v256_v49, %v588_v4 }
 0x144   :  { %v259_v51 = vpop.permute.xlu1 %258 }
 0x145   :  { %v276_v55 = vrot.slane %v259_v51, %v590_v6 }
 0x147   :  { %v277_v57 = vsel %vm185_vm1, %v276_v55, %v272_v54 }
 0x148   :  { %v278_v59 = vsel %vm196_vm2, %v277_v57, %v268_v56  ;;  %v51_v57 = vmul.f32 %v638_v52, %v597_v9 }
 0x149   :  { %v280_v60 = vsel %vm199_vm3, %v278_v59, -inf }
 0x14a   :  { %281 = vmax.xlane.f32.xlu0 %v280_v60  ;;  %v56_v60 = vsel %vm55_vm0, %v51_v57, 0.0 }
 0x14e   :  { %60 = vadd.xlane.f32.xlu0 %v59_v61 }
 0x152   :  { %63 = vadd.xlane.f32.xlu0 %v62_v63 }
 0x156   :  { %66 = vadd.xlane.f32.xlu0 %v65_v1 }
 0x16c   :  { %71 = vperm.xlu0 %435, %v68_v2  }
 0x1d7   :  { %v282_v3 = vpop.xlane.xlu0 %281 }
 0x1d8   :  { %v287_v5 = vrot.slane %v282_v3, %v611_v23  ;;  %v291_v7 = vrot.slane %v282_v3, %v614_v25 }
 0x1da   :  { %v294_v8 = vsub.f32 %v240_v39, %v287_v5  ;;  %v295_v10 = vsub.f32 %v241_v42, %v287_v5  ;;  %v296_v14 = vsub.f32 %v242_v43, %v291_v7  ;;  %v297_v16 = vsub.f32 %v243_v46, %v291_v7 }
 0x1db   :  { %v61_v11 = vpop.xlane.xlu0 %60 }
 0x1dc   :  { %v298_v13 = vmul.f32 1.442695, %v294_v8  ;;  %v300_v12 = vmul.f32 1.442695, %v295_v10  ;;  %v302_v17 = vmul.f32 1.442695, %v296_v14 }
 0x1dd   :  { %v304_v19 = vmul.f32 1.442695, %v297_v16 }
 0x1de   :  { %437 = vpow2.f32 %v298_v13 }
 0x1df   :  { %v64_v15 = vpop.xlane.xlu0 %63  ;;  %439 = vpow2.f32 %v300_v12 }
 0x1e0   :  { %441 = vpow2.f32 %v302_v17 }
 0x1e1   :  { %443 = vpow2.f32 %v304_v19 }
 0x1e3   :  { %v67_v18 = vpop.xlane.xlu0 %66 }
 0x1e8   :  { %v660_v20 = vpop.eup %437 }
 0x1e9   :  { %311 = vperm.xlu1 %436, %v660_v20   ;;  %v663_v22 = vpop.eup %439 }
 0x1ea   :  { %v671_v30 = vpop.eup %441 }
 0x1eb   :  { %v72_v21 = vpop.permute.xlu0 %71  ;;  %v677_v39 = vpop.eup %443 }
 0x1ec   :  { %v666_v24 = vrot.slane %v72_v21, %v611_v23  ;;  %v80_v26 = vrot.slane %v72_v21, %v614_v25 }
 0x1ed   :  { %314 = vperm.xlu1 %436, %v663_v22  }
 0x1ee   :  { %v84_v27 = vadd.f32 %v666_v24, %v61_v11  ;;  %v85_v28 = vadd.f32 %v80_v26, %v64_v15  ;;  %v86_v29 = vadd.f32 %v80_v26, %v67_v18 }
 0x1f0   :  { %v115_v31 = vadd.f32 %v623_v35, %v84_v27  ;;  %v116_v33 = vadd.f32 %v627_v40, %v85_v28  ;;  %v117_v34 = vadd.f32 %v631_v44, %v86_v29 }
 0x1f1   :  { %317 = vperm.xlu1 %436, %v671_v30  }
 0x1f2   :  { %v119_v36 = vand.u32 2147483647, %v115_v31  ;;  %v120_v37 = vand.u32 2147483647, %v116_v33  ;;  %v121_v38 = vand.u32 2147483647, %v117_v34 }
 0x1f3   :  { %vm147_vm4 = vcmp.ge.f32.partialorder %v115_v31, 0.0  ;;  %vm148_vm5 = vcmp.ge.f32.partialorder %v116_v33, 0.0  ;;  %vm149_vm6 = vcmp.ge.f32.partialorder %v117_v34, 0.0 }
 0x1f4   :  { %v123_v41 = vsub.f32 0.0, %v119_v36  ;;  %v124_v42 = vsub.f32 0.0, %v120_v37  ;;  %v125_v43 = vsub.f32 0.0, %v121_v38 }
 0x1f5   :  { %320 = vperm.xlu1 %436, %v677_v39  }
 0x1f6   :  { %v128_v45 = vmul.f32 1.442695, %v123_v41  ;;  %v130_v46 = vmul.f32 1.442695, %v124_v42  ;;  %v132_v47 = vmul.f32 1.442695, %v125_v43 }
 0x1f8   :  { %445 = vpow2.f32 %v128_v45 }
 0x1f9   :  { %447 = vpow2.f32 %v130_v46 }
 0x1fa   :  { %449 = vpow2.f32 %v132_v47 }
 0x202   :  { %v446_v35 = vpop.eup %445 }
 0x203   :  { %v448_v40 = vpop.eup %447  ;;  %v135_v44 = vadd.f32 1.0, %v446_v35 }
 0x204   :  { %v450_v48 = vpop.eup %449  ;;  %v136_v49 = vadd.f32 1.0, %v448_v40 }
 0x205   :  { %451 = vrcp.f32 %v135_v44  ;;  %v137_v50 = vadd.f32 1.0, %v450_v48 }
 0x206   :  { %453 = vrcp.f32 %v136_v49 }
 0x207   :  { %455 = vrcp.f32 %v137_v50 }
 0x20f   :  { %v452_v51 = vpop.eup %451 }
 0x210   :  { %v454_v53 = vpop.eup %453  ;;  %v151_v54 = vmul.f32 %v452_v51, %v446_v35 }
 0x211   :  { %v152_v56 = vmul.f32 %v454_v53, %v448_v40  ;;  %v456_v58 = vpop.eup %455 }
 0x212   :  { %v155_v55 = vsel %vm147_vm4, %v452_v51, %v151_v54  ;;  %v153_v61 = vmul.f32 %v456_v58, %v450_v48 }
 0x213   :  { %166 = vperm.xlu0 %435, %v155_v55   ;;  %v156_v59 = vsel %vm148_vm5, %v454_v53, %v152_v56 }
 0x214   :  { %v157_v62 = vsel %vm149_vm6, %v456_v58, %v153_v61 }
 0x217   :  { %169 = vperm.xlu0 %435, %v156_v59  }
 0x219   :  { %57 = vadd.xlane.f32.xlu1 %v56_v60 }
 0x21b   :  { %172 = vperm.xlu0 %435, %v157_v62  }
 0x268   :  { %v312_v63 = vpop.permute.xlu1 %311 }
 0x269   :  { %v325_v9 = vrot.slane %v312_v63, %v588_v4 }
 0x26c   :  { %v315_v0 = vpop.permute.xlu1 %314 }
 0x26d   :  { %v329_v2 = vrot.slane %v315_v0, %v590_v6 }
 0x26f   :  { %v330_v7 = vsel %vm185_vm1, %v329_v2, %v325_v9 }
 0x270   :  { %v318_v1 = vpop.permute.xlu1 %317 }
 0x271   :  { %v334_v52 = vrot.slane %v318_v1, %v588_v4 }
 0x274   :  { %v321_v3 = vpop.permute.xlu1 %320 }
 0x275   :  { %v338_v5 = vrot.slane %v321_v3, %v590_v6 }
 0x277   :  { %v339_v8 = vsel %vm185_vm1, %v338_v5, %v334_v52 }
 0x278   :  { %v340_v10 = vsel %vm196_vm2, %v339_v8, %v330_v7 }
 0x279   :  { %v342_v11 = vsel %vm199_vm3, %v340_v10, 0.0 }
 0x27a   :  { %343 = vadd.xlane.f32.xlu1 %v342_v11 }
 0x292   :  { %v167_v37 = vpop.permute.xlu0 %166 }
 0x296   :  { %v170_v38 = vpop.permute.xlu0 %169 }
 0x29a   :  { %v173_v41 = vpop.permute.xlu0 %172 }
 0x29b   :  { %v194_v42 = vrot.slane %v173_v41, %v590_v6 }
 0x2a6   :  { %v58_v13 = vpop.xlane.xlu1 %57 }
 0x2a7   :  { %v83_v14 = vadd.f32 %v666_v24, %v58_v13 }
 0x2a9   :  { %v114_v12 = vadd.f32 %v620_v32, %v83_v14 }
 0x2ab   :  { %v118_v15 = vand.u32 2147483647, %v114_v12  ;;  %vm146_vm7 = vcmp.ge.f32.partialorder %v114_v12, 0.0 }
 0x2ad   :  { %v122_v16 = vsub.f32 0.0, %v118_v15 }
 0x2af   :  { %v126_v17 = vmul.f32 1.442695, %v122_v16 }
 0x2b1   :  { %457 = vpow2.f32 %v126_v17 }
 0x2bb   :  { %v458_v18 = vpop.eup %457 }
 0x2bc   :  { %v134_v19 = vadd.f32 1.0, %v458_v18 }
 0x2be   :  { %459 = vrcp.f32 %v134_v19 }
 0x2c8   :  { %v460_v21 = vpop.eup %459 }
 0x2c9   :  { %v150_v26 = vmul.f32 %v460_v21, %v458_v18 }
 0x2cb   :  { %v154_v27 = vsel %vm146_vm7, %v460_v21, %v150_v26 }
 0x2cc   :  { %163 = vperm.xlu1 %436, %v154_v27  }
 0x307   :  { %v344_v28 = vpop.xlane.xlu1 %343 }
 0x308   :  { %461 = vrcp.f32 %v344_v28 }
 0x312   :  { %v462_v29 = vpop.eup %461 }
 0x313   :  { %v350_v31 = vrot.slane %v462_v29, %v611_v23  ;;  %v354_v33 = vrot.slane %v462_v29, %v614_v25  ;;  %v190_v25 = vrot.slane %v170_v38, %v588_v4 }
 0x315   :  { %v358_v24 = vmul.f32 %v663_v22, %v350_v31  ;;  %v357_v32 = vmul.f32 %v660_v20, %v350_v31  ;;  %v360_v34 = vmul.f32 %v677_v39, %v354_v33  ;;  %v359_v36 = vmul.f32 %v671_v30, %v354_v33 }
 0x316   :  { %v184_v20 = vrot.slane %v167_v37, %v590_v6  ;;  %v195_v39 = vsel %vm185_vm1, %v194_v42, %v190_v25 }
 0x317   :  { %369 = vperm.xlu0 %435, %v358_v24   ;;  %366 = vperm.xlu1 %436, %v357_v32  }
 0x31b   :  { %375 = vperm.xlu0 %435, %v360_v34   ;;  %372 = vperm.xlu1 %436, %v359_v36  }
 0x34b   :  { %v164_v23 = vpop.permute.xlu1 %163 }
 0x34c   :  { %v179_v22 = vrot.slane %v164_v23, %v588_v4 }
 0x34e   :  { %v186_v30 = vsel %vm185_vm1, %v184_v20, %v179_v22 }
 0x34f   :  { %v197_v43 = vsel %vm196_vm2, %v195_v39, %v186_v30 }
 0x350   :  { %200 = vst.msk [vmem:[#allocation5] sm:$0x3] %vm199_vm3, %v197_v43 }
 0x351   :  { %496 = shalt.err (!%p493_p12)
}
 0x352   :  { %s497_s21 = scalar_lea.hbm %s744_s5, 32 }
 0x353   :  { %p498_p13 = scmp.ne.s32.totalorder %s744_s5, %s497_s21  ;;  %p501_p0 = scmp.lt.u32.totalorder %s497_s21, %s744_s5 }
 0x355   :  { %p503_p1 = pnand %p501_p0, %p498_p13 }
 0x357   :  { %506 = shalt.err (!%p503_p1)
}
 0x358   :  { %407 = dma.vmem_to_hbm [thread:$0]  %s405_s17, 32, %s744_s5, [#allocation4]  }
 0x359   :  { %s540_s28 = smov [#allocation6]  }
 0x35a   :  { %s414_s29 = sshll.u32 %s540_s28, 4  ;;  %s415_s29 = int_to_ptr.vmem [resolvable:$true] %s414_s29 }
 0x35b   :  { %s507_s5 = scalar_lea.vmem %s415_s29, 32  ;;  %p512_p3 = scmp.lt.s32.totalorder %s415_s29, %s415_s29 }
 0x35c   :  { %p508_p2 = scmp.ne.s32.totalorder %s415_s29, %s507_s5  ;;  %p513_p4 = scmp.lt.s32.totalorder %s507_s5, %s507_s5 }
 0x35e   :  { %p514_p5 = por %p513_p4, %p512_p3 }
 0x360   :  { %p515_p6 = pnand %p514_p5, %p508_p2 }
 0x396   :  { %v370_v45 = vpop.permute.xlu0 %369  ;;  %v367_v46 = vpop.permute.xlu1 %366 }
 0x397   :  { %v384_v47 = vrot.slane %v370_v45, %v590_v6  ;;  %v380_v35 = vrot.slane %v367_v46, %v588_v4 }
 0x399   :  { %v385_v50 = vsel %vm185_vm1, %v384_v47, %v380_v35 }
 0x39a   :  { %v376_v40 = vpop.permute.xlu0 %375  ;;  %v373_v44 = vpop.permute.xlu1 %372 }
 0x39b   :  { %v393_v48 = vrot.slane %v376_v40, %v590_v6  ;;  %v389_v49 = vrot.slane %v373_v44, %v588_v4 }
 0x39d   :  { %v394_v51 = vsel %vm185_vm1, %v393_v48, %v389_v49 }
 0x39e   :  { %v395_v53 = vsel %vm196_vm2, %v394_v51, %v385_v50 }
 0x39f   :  { %397 = vst.msk [vmem:[#allocation6] sm:$0x3] %vm199_vm3, %v395_v53 }
 0x3a0   :  { %518 = shalt.err (!%p515_p6)
}
 0x3a1   :  { %s519_s8 = scalar_lea.hbm %s745_s6, 32 }
 0x3a2   :  { %p520_p7 = scmp.ne.s32.totalorder %s745_s6, %s519_s8  ;;  %p523_p8 = scmp.lt.u32.totalorder %s519_s8, %s745_s6 }
 0x3a4   :  { %p525_p9 = pnand %p523_p8, %p520_p7 }
 0x3a6   :  { %528 = shalt.err (!%p525_p9)
}
 0x3a7   :  { %417 = dma.vmem_to_hbm [thread:$0]  %s415_s29, 32, %s745_s6, [#allocation7]  }
 0x3a8   :  { %531 = dma.done.wait [#allocation4], 32  }
 0x3a9   :  { %532 = vsyncadd [#allocation4], 4294967264 }
 0x3aa   :  { %533 = dma.done.wait [#allocation7], 32  }
 0x3ab   :  { %534 = vsyncadd [#allocation7], 4294967264 }
 0x3ac   :  { %424 = vsyncpa [#allocation3], 1 }
 0x3ad   :  { %425 = vsyncpa [#allocation4], 1 }
 0x3ae   :  { %426 = vsyncpa [#allocation7], 1 }

</bundles_post_ra>
